<compile_context>
chip_gen: v6e
topology: v6e:2x2x1
jax: 0.10.0
libtpu: 0.0.40
codegen_flags: <defaults>
</compile_context>

<pallas_src>
import functools

import jax
import jax.numpy as jnp
from jax import lax
from jax.experimental import pallas as pl
from jax.experimental.pallas import tpu as pltpu

SCALE = 10.0


def _matching_loss_kernel(im_ref, s_ref, out_ref,
                          row_m, row_s, col_m, col_s, acc,
                          *, batch):
    i = pl.program_id(0)          # row-block index  (reduction axis for col lse)
    j = pl.program_id(1)          # col-block index  (reduction axis for row lse)
    n_i = pl.num_programs(0)
    n_j = pl.num_programs(1)

    # ---- init scalar accumulator on the very first grid step --------------
    @pl.when(jnp.logical_and(i == 0, j == 0))
    def _():
        acc[...] = jnp.zeros_like(acc)

    # ---- similarity tile on the MXU (contract last dims, no s.T) ----------
    scores = SCALE * lax.dot_general(
        im_ref[...], s_ref[...],
        dimension_numbers=(((1,), (1,)), ((), ())),
        preferred_element_type=jnp.float32)            # (tm, tn) f32

    # ---- online logsumexp over dim=1 (per row); j is the inner axis -------
    @pl.when(j == 0)
    def _():
        row_m[...] = jnp.full_like(row_m, -jnp.inf)
        row_s[...] = jnp.zeros_like(row_s)

    r_max = jnp.max(scores, axis=1, keepdims=True)                 # (tm, 1)
    new_rm = jnp.maximum(row_m[...], r_max)
    row_s[...] = (row_s[...] * jnp.exp(row_m[...] - new_rm)
                  + jnp.sum(jnp.exp(scores - new_rm), axis=1, keepdims=True))
    row_m[...] = new_rm

    # ---- online logsumexp over dim=0 (per column); i is the outer axis ----
    @pl.when(i == 0)
    def _():
        col_m[j] = jnp.full(col_m.shape[1:], -jnp.inf, jnp.float32)
        col_s[j] = jnp.zeros(col_s.shape[1:], jnp.float32)

    cm = col_m[j]                                                  # (1, tn)
    cs = col_s[j]
    c_max = jnp.max(scores, axis=0, keepdims=True)                 # (1, tn)
    new_cm = jnp.maximum(cm, c_max)
    col_s[j] = (cs * jnp.exp(cm - new_cm)
                + jnp.sum(jnp.exp(scores - new_cm), axis=0, keepdims=True))
    col_m[j] = new_cm

    # ---- diagonal contribution: only diagonal blocks hold global diag -----
    @pl.when(i == j)
    def _():
        rows = lax.broadcasted_iota(jnp.int32, scores.shape, 0)
        cols = lax.broadcasted_iota(jnp.int32, scores.shape, 1)
        diag_sum = jnp.sum(jnp.where(rows == cols, scores, 0.0))
        acc[...] = acc[...] - 2.0 * diag_sum

    # ---- row lse for this row block is complete after the last col block --
    @pl.when(j == n_j - 1)
    def _():
        acc[...] = acc[...] + jnp.sum(row_m[...] + jnp.log(row_s[...]))

    # ---- col lse for this col block is complete after the last row block --
    @pl.when(i == n_i - 1)
    def _():
        acc[...] = acc[...] + jnp.sum(col_m[j] + jnp.log(col_s[j]))

    # ---- final: mean over the batch, written once -------------------------
    @pl.when(jnp.logical_and(i == n_i - 1, j == n_j - 1))
    def _():
        out_ref[...] = acc[...] * (1.0 / batch)


def _pick_tile(b):
    for t in (512, 256, 128):
        if b % t == 0:
            return t
    return b  # small batches: single block (block shape == full array dims)


def matching_loss(im, s, *, tile=None):
    b, d = im.shape
    assert s.shape == (b, d), "im and s must have matching shapes"
    t = _pick_tile(b) if tile is None else tile
    assert b % t == 0, "batch must be divisible by the tile size"
    n_blk = b // t

    kernel = functools.partial(_matching_loss_kernel, batch=float(b))

    out = pl.pallas_call(
        kernel,
        out_shape=jax.ShapeDtypeStruct((1, 1), jnp.float32),
        grid_spec=pltpu.PrefetchScalarGridSpec(
            num_scalar_prefetch=0,
            grid=(n_blk, n_blk),
            in_specs=[
                pl.BlockSpec((t, d), lambda i, j: (i, 0)),   # im row block
                pl.BlockSpec((t, d), lambda i, j: (j, 0)),   # s  col block
            ],
            out_specs=pl.BlockSpec((1, 1), lambda i, j: (0, 0)),
            scratch_shapes=[
                pltpu.VMEM((t, 1), jnp.float32),              # row_m
                pltpu.VMEM((t, 1), jnp.float32),              # row_s
                pltpu.VMEM((n_blk, 1, t), jnp.float32),       # col_m
                pltpu.VMEM((n_blk, 1, t), jnp.float32),       # col_s
                pltpu.VMEM((1, 1), jnp.float32),              # scalar loss acc
            ]),
        # Both grid axes carry running reductions (row lse over j, col lse
        # over i), so both must be "arbitrary".
        compiler_params=pltpu.CompilerParams(
            dimension_semantics=("arbitrary", "arbitrary")),
        cost_estimate=pl.CostEstimate(
            flops=2 * b * b * d + 8 * b * b,
            transcendentals=2 * b * b,
            bytes_accessed=2 * b * d * 4 + 4),
    )(im, s)
    return out[0, 0]


def matching_loss_ref(im, s):
    """Pure-JAX reference mirroring the PyTorch forward."""
    scores = SCALE * (im @ s.T)
    img_cap = -jax.nn.log_softmax(scores, axis=0)
    cap_img = -jax.nn.log_softmax(scores, axis=1)
    l1 = jnp.diag(img_cap)
    l2 = jnp.diag(cap_img)
    return l1.mean() + l2.mean()


if __name__ == "__main__":
    key = jax.random.PRNGKey(0)

    # --- case 1: small demo shape (single block) ---
    k1, k2, k3, k4 = jax.random.split(key, 4)
    B, D = 8, 32
    im = jax.random.normal(k1, (B, D), dtype=jnp.float32)
    s = jax.random.normal(k2, (B, D), dtype=jnp.float32)
    im = im / jnp.linalg.norm(im, axis=1, keepdims=True)
    s = s / jnp.linalg.norm(s, axis=1, keepdims=True)

    loss = jax.block_until_ready(matching_loss(im, s))
    ref = jax.block_until_ready(matching_loss_ref(im, s))
    assert jnp.allclose(loss, ref, rtol=1e-4, atol=1e-4), (loss, ref)

    # --- case 2: exercise the tiled grid (2x2 blocks, online logsumexp) ---
    B2, D2 = 256, 128
    im2 = jax.random.normal(k3, (B2, D2), dtype=jnp.float32)
    s2 = jax.random.normal(k4, (B2, D2), dtype=jnp.float32)
    im2 = im2 / jnp.linalg.norm(im2, axis=1, keepdims=True)
    s2 = s2 / jnp.linalg.norm(s2, axis=1, keepdims=True)

    loss2 = jax.block_until_ready(matching_loss(im2, s2, tile=128))
    ref2 = jax.block_until_ready(matching_loss_ref(im2, s2))
    assert jnp.allclose(loss2, ref2, rtol=1e-4, atol=1e-4), (loss2, ref2)

    print("KERNEL_OK")
</pallas_src>

<mosaic_0001>
module attributes {stable_mosaic.version = 11 : i64} {
  func.func @_matching_loss_kernel(%arg0: i32, %arg1: i32, %arg2: memref<8x32xf32, #tpu.memory_space<vmem>>, %arg3: memref<8x32xf32, #tpu.memory_space<vmem>>, %arg4: memref<1x1xf32, #tpu.memory_space<vmem>>, %arg5: memref<8x1xf32, #tpu.memory_space<vmem>>, %arg6: memref<8x1xf32, #tpu.memory_space<vmem>>, %arg7: memref<1x1x8xf32, #tpu.memory_space<vmem>>, %arg8: memref<1x1x8xf32, #tpu.memory_space<vmem>>, %arg9: memref<1x1xf32, #tpu.memory_space<vmem>>) attributes {dimension_semantics = [#tpu.dimension_semantics<arbitrary>, #tpu.dimension_semantics<arbitrary>], iteration_bounds = array<i64: 1, 1>, scalar_prefetch = 0 : i64, scratch_operands = 5 : i64, tpu.core_type = #tpu.core_type<tc>, window_params = [{transform_indices = @transform_0, window_bounds = array<i64: 8, 32>}, {transform_indices = @transform_1, window_bounds = array<i64: 8, 32>}, {pipeline_mode = #tpu.pipeline_mode<synchronous>, transform_indices = @transform_2, window_bounds = array<i64: 1, 1>}]} {
    %c0_i32 = arith.constant 0 : i32
    %0 = arith.cmpi eq, %arg0, %c0_i32 : i32
    %c0_i32_0 = arith.constant 0 : i32
    %1 = arith.cmpi eq, %arg1, %c0_i32_0 : i32
    %2 = arith.andi %0, %1 : i1
    %3 = arith.extui %2 : i1 to i32
    %c0_i32_1 = arith.constant 0 : i32
    %4 = arith.cmpi ne, %3, %c0_i32_1 : i32
    scf.if %4 {
      %cst_40 = arith.constant 0.000000e+00 : f32
      %73 = vector.broadcast %cst_40 : f32 to vector<1x1xf32>
      %c0_41 = arith.constant 0 : index
      %c0_42 = arith.constant 0 : index
      %74 = vector.load %arg9[%c0_41, %c0_42] : memref<1x1xf32, #tpu.memory_space<vmem>>, vector<1x1xf32>
      tpu.vector_store %arg9[%c0_41, %c0_42], %73 {strides = array<i32>} : memref<1x1xf32, #tpu.memory_space<vmem>>, vector<1x1xf32>,
    } else {
    }
    %c0 = arith.constant 0 : index
    %c0_2 = arith.constant 0 : index
    %5 = vector.load %arg2[%c0, %c0_2] : memref<8x32xf32, #tpu.memory_space<vmem>>, vector<8x32xf32>
    %c0_3 = arith.constant 0 : index
    %c0_4 = arith.constant 0 : index
    %6 = vector.load %arg3[%c0_3, %c0_4] : memref<8x32xf32, #tpu.memory_space<vmem>>, vector<8x32xf32>
    %cst = arith.constant dense<0.000000e+00> : vector<8x8xf32>
    %7 = tpu.matmul %5, %6, %cst {dimension_numbers = #tpu.dot_dimension_numbers<[1], [1], [0], [0], [0, 0, 1, 0], [], []>} : vector<8x32xf32>, vector<8x32xf32>, vector<8x8xf32> -> vector<8x8xf32>
    %cst_5 = arith.constant 1.000000e+01 : f32
    %8 = vector.broadcast %cst_5 : f32 to vector<8x8xf32>
    %9 = arith.mulf %8, %7 : vector<8x8xf32>
    %c0_i32_6 = arith.constant 0 : i32
    %10 = arith.cmpi eq, %arg1, %c0_i32_6 : i32
    %11 = arith.extui %10 : i1 to i32
    %c0_i32_7 = arith.constant 0 : i32
    %12 = arith.cmpi ne, %11, %c0_i32_7 : i32
    scf.if %12 {
      %cst_40 = arith.constant 0xFF800000 : f32
      %73 = vector.broadcast %cst_40 : f32 to vector<8x1xf32>
      %c0_41 = arith.constant 0 : index
      %c0_42 = arith.constant 0 : index
      %74 = vector.load %arg5[%c0_41, %c0_42] : memref<8x1xf32, #tpu.memory_space<vmem>>, vector<8x1xf32>
      tpu.vector_store %arg5[%c0_41, %c0_42], %73 {strides = array<i32>} : memref<8x1xf32, #tpu.memory_space<vmem>>, vector<8x1xf32>,
      %cst_43 = arith.constant 0.000000e+00 : f32
      %75 = vector.broadcast %cst_43 : f32 to vector<8x1xf32>
      %c0_44 = arith.constant 0 : index
      %c0_45 = arith.constant 0 : index
      %76 = vector.load %arg6[%c0_44, %c0_45] : memref<8x1xf32, #tpu.memory_space<vmem>>, vector<8x1xf32>
      tpu.vector_store %arg6[%c0_44, %c0_45], %75 {strides = array<i32>} : memref<8x1xf32, #tpu.memory_space<vmem>>, vector<8x1xf32>,
    } else {
    }
    %cst_8 = arith.constant dense<0xFF800000> : vector<8xf32>
    %13 = vector.multi_reduction <maximumf>, %9, %cst_8 [1] : vector<8x8xf32> to vector<8xf32>
    %14 = vector.shape_cast %13 : vector<8xf32> to vector<8x1xf32>
    %c0_9 = arith.constant 0 : index
    %c0_10 = arith.constant 0 : index
    %15 = vector.load %arg5[%c0_9, %c0_10] : memref<8x1xf32, #tpu.memory_space<vmem>>, vector<8x1xf32>
    %16 = arith.maximumf %15, %14 : vector<8x1xf32>
    %c0_11 = arith.constant 0 : index
    %c0_12 = arith.constant 0 : index
    %17 = vector.load %arg6[%c0_11, %c0_12] : memref<8x1xf32, #tpu.memory_space<vmem>>, vector<8x1xf32>
    %c0_13 = arith.constant 0 : index
    %c0_14 = arith.constant 0 : index
    %18 = vector.load %arg5[%c0_13, %c0_14] : memref<8x1xf32, #tpu.memory_space<vmem>>, vector<8x1xf32>
    %19 = arith.subf %18, %16 : vector<8x1xf32>
    %20 = math.exp %19 : vector<8x1xf32>
    %21 = arith.mulf %17, %20 : vector<8x1xf32>
    %22 = vector.broadcast %16 : vector<8x1xf32> to vector<8x8xf32>
    %23 = arith.subf %9, %22 : vector<8x8xf32>
    %24 = math.exp %23 : vector<8x8xf32>
    %cst_15 = arith.constant dense<0.000000e+00> : vector<8xf32>
    %25 = vector.multi_reduction <add>, %24, %cst_15 [1] : vector<8x8xf32> to vector<8xf32>
    %26 = vector.shape_cast %25 : vector<8xf32> to vector<8x1xf32>
    %27 = arith.addf %21, %26 : vector<8x1xf32>
    %c0_16 = arith.constant 0 : index
    %c0_17 = arith.constant 0 : index
    %28 = vector.load %arg6[%c0_16, %c0_17] : memref<8x1xf32, #tpu.memory_space<vmem>>, vector<8x1xf32>
    tpu.vector_store %arg6[%c0_16, %c0_17], %27 {strides = array<i32>} : memref<8x1xf32, #tpu.memory_space<vmem>>, vector<8x1xf32>,
    %c0_18 = arith.constant 0 : index
    %c0_19 = arith.constant 0 : index
    %29 = vector.load %arg5[%c0_18, %c0_19] : memref<8x1xf32, #tpu.memory_space<vmem>>, vector<8x1xf32>
    tpu.vector_store %arg5[%c0_18, %c0_19], %16 {strides = array<i32>} : memref<8x1xf32, #tpu.memory_space<vmem>>, vector<8x1xf32>,
    %c0_i32_20 = arith.constant 0 : i32
    %30 = arith.cmpi eq, %arg0, %c0_i32_20 : i32
    %31 = arith.extui %30 : i1 to i32
    %c0_i32_21 = arith.constant 0 : i32
    %32 = arith.cmpi ne, %31, %c0_i32_21 : i32
    scf.if %32 {
      %cst_40 = arith.constant 0xFF800000 : f32
      %73 = vector.broadcast %cst_40 : f32 to vector<1x8xf32>
      %74 = arith.index_cast %arg1 : i32 to index
      %c0_41 = arith.constant 0 : index
      %c0_42 = arith.constant 0 : index
      %75 = vector.load %arg7[%74, %c0_41, %c0_42] : memref<1x1x8xf32, #tpu.memory_space<vmem>>, vector<1x1x8xf32>
      %76 = vector.shape_cast %75 : vector<1x1x8xf32> to vector<1x8xf32>
      %77 = vector.shape_cast %73 : vector<1x8xf32> to vector<1x1x8xf32>
      tpu.vector_store %arg7[%74, %c0_41, %c0_42], %77 {strides = array<i32>} : memref<1x1x8xf32, #tpu.memory_space<vmem>>, vector<1x1x8xf32>,
      %cst_43 = arith.constant 0.000000e+00 : f32
      %78 = vector.broadcast %cst_43 : f32 to vector<1x8xf32>
      %79 = arith.index_cast %arg1 : i32 to index
      %c0_44 = arith.constant 0 : index
      %c0_45 = arith.constant 0 : index
      %80 = vector.load %arg8[%79, %c0_44, %c0_45] : memref<1x1x8xf32, #tpu.memory_space<vmem>>, vector<1x1x8xf32>
      %81 = vector.shape_cast %80 : vector<1x1x8xf32> to vector<1x8xf32>
      %82 = vector.shape_cast %78 : vector<1x8xf32> to vector<1x1x8xf32>
      tpu.vector_store %arg8[%79, %c0_44, %c0_45], %82 {strides = array<i32>} : memref<1x1x8xf32, #tpu.memory_space<vmem>>, vector<1x1x8xf32>,
    } else {
    }
    %33 = arith.index_cast %arg1 : i32 to index
    %c0_22 = arith.constant 0 : index
    %c0_23 = arith.constant 0 : index
    %34 = vector.load %arg7[%33, %c0_22, %c0_23] : memref<1x1x8xf32, #tpu.memory_space<vmem>>, vector<1x1x8xf32>
    %35 = vector.shape_cast %34 : vector<1x1x8xf32> to vector<1x8xf32>
    %36 = arith.index_cast %arg1 : i32 to index
    %c0_24 = arith.constant 0 : index
    %c0_25 = arith.constant 0 : index
    %37 = vector.load %arg8[%36, %c0_24, %c0_25] : memref<1x1x8xf32, #tpu.memory_space<vmem>>, vector<1x1x8xf32>
    %38 = vector.shape_cast %37 : vector<1x1x8xf32> to vector<1x8xf32>
    %cst_26 = arith.constant dense<0xFF800000> : vector<8xf32>
    %39 = vector.multi_reduction <maximumf>, %9, %cst_26 [0] : vector<8x8xf32> to vector<8xf32>
    %40 = vector.shape_cast %39 : vector<8xf32> to vector<1x8xf32>
    %41 = arith.maximumf %35, %40 : vector<1x8xf32>
    %42 = arith.subf %35, %41 : vector<1x8xf32>
    %43 = math.exp %42 : vector<1x8xf32>
    %44 = arith.mulf %38, %43 : vector<1x8xf32>
    %45 = vector.broadcast %41 : vector<1x8xf32> to vector<8x8xf32>
    %46 = arith.subf %9, %45 : vector<8x8xf32>
    %47 = math.exp %46 : vector<8x8xf32>
    %cst_27 = arith.constant dense<0.000000e+00> : vector<8xf32>
    %48 = vector.multi_reduction <add>, %47, %cst_27 [0] : vector<8x8xf32> to vector<8xf32>
    %49 = vector.shape_cast %48 : vector<8xf32> to vector<1x8xf32>
    %50 = arith.addf %44, %49 : vector<1x8xf32>
    %51 = arith.index_cast %arg1 : i32 to index
    %c0_28 = arith.constant 0 : index
    %c0_29 = arith.constant 0 : index
    %52 = vector.load %arg8[%51, %c0_28, %c0_29] : memref<1x1x8xf32, #tpu.memory_space<vmem>>, vector<1x1x8xf32>
    %53 = vector.shape_cast %52 : vector<1x1x8xf32> to vector<1x8xf32>
    %54 = vector.shape_cast %50 : vector<1x8xf32> to vector<1x1x8xf32>
    tpu.vector_store %arg8[%51, %c0_28, %c0_29], %54 {strides = array<i32>} : memref<1x1x8xf32, #tpu.memory_space<vmem>>, vector<1x1x8xf32>,
    %55 = arith.index_cast %arg1 : i32 to index
    %c0_30 = arith.constant 0 : index
    %c0_31 = arith.constant 0 : index
    %56 = vector.load %arg7[%55, %c0_30, %c0_31] : memref<1x1x8xf32, #tpu.memory_space<vmem>>, vector<1x1x8xf32>
    %57 = vector.shape_cast %56 : vector<1x1x8xf32> to vector<1x8xf32>
    %58 = vector.shape_cast %41 : vector<1x8xf32> to vector<1x1x8xf32>
    tpu.vector_store %arg7[%55, %c0_30, %c0_31], %58 {strides = array<i32>} : memref<1x1x8xf32, #tpu.memory_space<vmem>>, vector<1x1x8xf32>,
    %59 = arith.cmpi eq, %arg0, %arg1 : i32
    %60 = arith.extui %59 : i1 to i32
    %c0_i32_32 = arith.constant 0 : i32
    %61 = arith.cmpi ne, %60, %c0_i32_32 : i32
    scf.if %61 {
      %73 = tpu.iota {dimensions = array<i32: 0>} : vector<8x8xi32>
      %74 = tpu.iota {dimensions = array<i32: 1>} : vector<8x8xi32>
      %75 = arith.cmpi eq, %73, %74 : vector<8x8xi32>
      %cst_40 = arith.constant 0.000000e+00 : f32
      %76 = vector.broadcast %cst_40 : f32 to vector<8x8xf32>
      %77 = arith.select %75, %9, %76 : vector<8x8xi1>, vector<8x8xf32>
      %78 = vector.shape_cast %77 : vector<8x8xf32> to vector<1x8x8xf32>
      %cst_41 = arith.constant dense<0.000000e+00> : vector<1xf32>
      %79 = vector.multi_reduction <add>, %78, %cst_41 [1, 2] : vector<1x8x8xf32> to vector<1xf32>
      %80 = vector.shape_cast %79 : vector<1xf32> to vector<1x1x1xf32>
      %81 = vector.extract %80[0, 0, 0] : f32 from vector<1x1x1xf32>
      %c0_42 = arith.constant 0 : index
      %c0_43 = arith.constant 0 : index
      %82 = vector.load %arg9[%c0_42, %c0_43] : memref<1x1xf32, #tpu.memory_space<vmem>>, vector<1x1xf32>
      %cst_44 = arith.constant 2.000000e+00 : f32
      %83 = arith.mulf %cst_44, %81 : f32
      %84 = vector.broadcast %83 : f32 to vector<1x1xf32>
      %85 = arith.subf %82, %84 : vector<1x1xf32>
      %c0_45 = arith.constant 0 : index
      %c0_46 = arith.constant 0 : index
      %86 = vector.load %arg9[%c0_45, %c0_46] : memref<1x1xf32, #tpu.memory_space<vmem>>, vector<1x1xf32>
      tpu.vector_store %arg9[%c0_45, %c0_46], %85 {strides = array<i32>} : memref<1x1xf32, #tpu.memory_space<vmem>>, vector<1x1xf32>,
    } else {
    }
    %c0_i32_33 = arith.constant 0 : i32
    %62 = arith.cmpi eq, %arg1, %c0_i32_33 : i32
    %63 = arith.extui %62 : i1 to i32
    %c0_i32_34 = arith.constant 0 : i32
    %64 = arith.cmpi ne, %63, %c0_i32_34 : i32
    scf.if %64 {
      %c0_40 = arith.constant 0 : index
      %c0_41 = arith.constant 0 : index
      %73 = vector.load %arg9[%c0_40, %c0_41] : memref<1x1xf32, #tpu.memory_space<vmem>>, vector<1x1xf32>
      %c0_42 = arith.constant 0 : index
      %c0_43 = arith.constant 0 : index
      %74 = vector.load %arg5[%c0_42, %c0_43] : memref<8x1xf32, #tpu.memory_space<vmem>>, vector<8x1xf32>
      %c0_44 = arith.constant 0 : index
      %c0_45 = arith.constant 0 : index
      %75 = vector.load %arg6[%c0_44, %c0_45] : memref<8x1xf32, #tpu.memory_space<vmem>>, vector<8x1xf32>
      %76 = math.log %75 : vector<8x1xf32>
      %77 = arith.addf %74, %76 : vector<8x1xf32>
      %78 = vector.shape_cast %77 : vector<8x1xf32> to vector<1x8x1xf32>
      %cst_46 = arith.constant dense<0.000000e+00> : vector<1xf32>
      %79 = vector.multi_reduction <add>, %78, %cst_46 [1, 2] : vector<1x8x1xf32> to vector<1xf32>
      %80 = vector.shape_cast %79 : vector<1xf32> to vector<1x1x1xf32>
      %81 = vector.extract %80[0, 0, 0] : f32 from vector<1x1x1xf32>
      %82 = vector.broadcast %81 : f32 to vector<1x1xf32>
      %83 = arith.addf %73, %82 : vector<1x1xf32>
      %c0_47 = arith.constant 0 : index
      %c0_48 = arith.constant 0 : index
      %84 = vector.load %arg9[%c0_47, %c0_48] : memref<1x1xf32, #tpu.memory_space<vmem>>, vector<1x1xf32>
      tpu.vector_store %arg9[%c0_47, %c0_48], %83 {strides = array<i32>} : memref<1x1xf32, #tpu.memory_space<vmem>>, vector<1x1xf32>,
    } else {
    }
    %c0_i32_35 = arith.constant 0 : i32
    %65 = arith.cmpi eq, %arg0, %c0_i32_35 : i32
    %66 = arith.extui %65 : i1 to i32
    %c0_i32_36 = arith.constant 0 : i32
    %67 = arith.cmpi ne, %66, %c0_i32_36 : i32
    scf.if %67 {
      %c0_40 = arith.constant 0 : index
      %c0_41 = arith.constant 0 : index
      %73 = vector.load %arg9[%c0_40, %c0_41] : memref<1x1xf32, #tpu.memory_space<vmem>>, vector<1x1xf32>
      %74 = arith.index_cast %arg1 : i32 to index
      %c0_42 = arith.constant 0 : index
      %c0_43 = arith.constant 0 : index
      %75 = vector.load %arg7[%74, %c0_42, %c0_43] : memref<1x1x8xf32, #tpu.memory_space<vmem>>, vector<1x1x8xf32>
      %76 = vector.shape_cast %75 : vector<1x1x8xf32> to vector<1x8xf32>
      %77 = arith.index_cast %arg1 : i32 to index
      %c0_44 = arith.constant 0 : index
      %c0_45 = arith.constant 0 : index
      %78 = vector.load %arg8[%77, %c0_44, %c0_45] : memref<1x1x8xf32, #tpu.memory_space<vmem>>, vector<1x1x8xf32>
      %79 = vector.shape_cast %78 : vector<1x1x8xf32> to vector<1x8xf32>
      %80 = math.log %79 : vector<1x8xf32>
      %81 = arith.addf %76, %80 : vector<1x8xf32>
      %82 = vector.shape_cast %81 : vector<1x8xf32> to vector<1x1x8xf32>
      %cst_46 = arith.constant dense<0.000000e+00> : vector<1xf32>
      %83 = vector.multi_reduction <add>, %82, %cst_46 [1, 2] : vector<1x1x8xf32> to vector<1xf32>
      %84 = vector.shape_cast %83 : vector<1xf32> to vector<1x1x1xf32>
      %85 = vector.extract %84[0, 0, 0] : f32 from vector<1x1x1xf32>
      %86 = vector.broadcast %85 : f32 to vector<1x1xf32>
      %87 = arith.addf %73, %86 : vector<1x1xf32>
      %c0_47 = arith.constant 0 : index
      %c0_48 = arith.constant 0 : index
      %88 = vector.load %arg9[%c0_47, %c0_48] : memref<1x1xf32, #tpu.memory_space<vmem>>, vector<1x1xf32>
      tpu.vector_store %arg9[%c0_47, %c0_48], %87 {strides = array<i32>} : memref<1x1xf32, #tpu.memory_space<vmem>>, vector<1x1xf32>,
    } else {
    }
    %c0_i32_37 = arith.constant 0 : i32
    %68 = arith.cmpi eq, %arg0, %c0_i32_37 : i32
    %c0_i32_38 = arith.constant 0 : i32
    %69 = arith.cmpi eq, %arg1, %c0_i32_38 : i32
    %70 = arith.andi %68, %69 : i1
    %71 = arith.extui %70 : i1 to i32
    %c0_i32_39 = arith.constant 0 : i32
    %72 = arith.cmpi ne, %71, %c0_i32_39 : i32
    scf.if %72 {
      %c0_40 = arith.constant 0 : index
      %c0_41 = arith.constant 0 : index
      %73 = vector.load %arg9[%c0_40, %c0_41] : memref<1x1xf32, #tpu.memory_space<vmem>>, vector<1x1xf32>
      %cst_42 = arith.constant 1.250000e-01 : f32
      %74 = vector.broadcast %cst_42 : f32 to vector<1x1xf32>
      %75 = arith.mulf %73, %74 : vector<1x1xf32>
      %c0_43 = arith.constant 0 : index
      %c0_44 = arith.constant 0 : index
      %76 = vector.load %arg4[%c0_43, %c0_44] : memref<1x1xf32, #tpu.memory_space<vmem>>, vector<1x1xf32>
      tpu.vector_store %arg4[%c0_43, %c0_44], %75 {strides = array<i32>} : memref<1x1xf32, #tpu.memory_space<vmem>>, vector<1x1xf32>,
    } else {
    }
    return
  }
  func.func @transform_0(%arg0: i32, %arg1: i32) -> (i32, i32) {
    %c0_i32 = arith.constant 0 : i32
    %c0_i32_0 = arith.constant 0 : i32
    return %arg0, %c0_i32 : i32, i32
  }
  func.func @transform_1(%arg0: i32, %arg1: i32) -> (i32, i32) {
    %c0_i32 = arith.constant 0 : i32
    %c0_i32_0 = arith.constant 0 : i32
    return %arg1, %c0_i32 : i32, i32
  }
  func.func @transform_2(%arg0: i32, %arg1: i32) -> (i32, i32) {
    %c0_i32 = arith.constant 0 : i32
    %c0_i32_0 = arith.constant 0 : i32
    %c0_i32_1 = arith.constant 0 : i32
    return %c0_i32, %c0_i32_0 : i32, i32
  }
}

</mosaic_0001>

<bundles_post_ra>
// kernel: tpu_custom_call.1
= control target key start
LH: loop header
LB: loop body
LE: loop exit
PB: predicated region body
PF: predicated region fallthrough
CT: control target
= control target key end

     0   :  { %7 = vsyncpa [#allocation8], 0  ;;  %s446_s0 = inlined_call_operand.hbm [shape: f32[8,32], index: 0, kind: input, shape index: {}]   ;;  %s447_s1 = inlined_call_operand.hbm [shape: f32[8,32], index: 1, kind: input, shape index: {}]   ;;  %s448_s2 = inlined_call_operand.hbm [shape: f32[1,1], index: 2, kind: output, shape index: {}]  }
   0x1   :  { %8 = vsyncpa [#allocation11], 0 }
   0x2   :  { %9 = vsyncpa [#allocation9], 0  ;;  %s390_s9 = smov [#allocation7]   ;;  %s391_s11 = smov [#allocation10]  }
   0x3   :  { %s16_s10 = sshll.u32 %s390_s9, 4  ;;  %s26_s12 = sshll.u32 %s391_s11, 4  ;;  %s17_s10 = int_to_ptr.vmem [resolvable:$true] %s16_s10  ;;  %s27_s12 = int_to_ptr.vmem [resolvable:$true] %s26_s12 }
   0x4   :  { %s332_s13 = scalar_lea.vmem %s17_s10, 128  ;;  %p337_p1 = scmp.lt.s32.totalorder %s17_s10, %s17_s10 }
   0x5   :  { %p333_p0 = scmp.ne.s32.totalorder %s17_s10, %s332_s13  ;;  %p338_p2 = scmp.lt.s32.totalorder %s332_s13, %s332_s13 }
   0x7   :  { %p339_p3 = por %p338_p2, %p337_p1 }
   0x9   :  { %p340_p4 = pnand %p339_p3, %p333_p0 }
   0xb   :  { %343 = shalt.err (!%p340_p4)
}
   0xc   :  { %19 = dma.hbm_to_vmem [thread:$0]  %s446_s0, 128, %s17_s10, [#allocation8]  }
   0xd   :  { %s352_s16 = scalar_lea.vmem %s27_s12, 128  ;;  %p357_p6 = scmp.lt.s32.totalorder %s27_s12, %s27_s12 }
   0xe   :  { %p353_p5 = scmp.ne.s32.totalorder %s27_s12, %s352_s16  ;;  %p358_p7 = scmp.lt.s32.totalorder %s352_s16, %s352_s16 }
  0x10   :  { %p359_p8 = por %p358_p7, %p357_p6 }
  0x12   :  { %p360_p9 = pnand %p359_p8, %p353_p5 }
  0x14   :  { %363 = shalt.err (!%p360_p9)
}
  0x15   :  { %29 = dma.hbm_to_vmem [thread:$0]  %s447_s1, 128, %s27_s12, [#allocation11]  }
  0x16   :  { %384 = dma.done.wait [#allocation8], 128  }
  0x17   :  { %385 = vsyncadd [#allocation8], 4294967168 }
  0x18   :  { %386 = dma.done.wait [#allocation11], 128  }
  0x19   :  { %387 = vsyncadd [#allocation11], 4294967168  ;;  %vm127_vm0 = vcmask 7168   ;;  %v392_v0 = vmov 0.0   ;;  %vm393_vm1 = vmmov 0   ;;  %vm46_vm2 = vcmask 261120  }
  0x1a   :  { %293 = vmatprep.subr.mxu0 %v392_v0  ;;  %129 = vst.msk [vmem:[#allocation3] sm:$0xff] %vm127_vm0, %v392_v0  ;;  %295 = vmatprep.mubr.msk.f32.mxu0 %vm393_vm1, %v392_v0  ;;  %v45_v1 = vld [vmem:[#allocation10] sm:$0xff]  ;;  %v44_v2 = vld [vmem:[#allocation7] sm:$0xff]  ;;  %v176_v3 = vlaneseq  ;;  %vm159_vm4 = vcmask 57344   ;;  %v394_v6 = vmov -inf   ;;  %vm130_vm5 = vcmask 64512  }
  0x1b   :  { %294 = vmatpush3.xpose.msk.msra.mxu0 %vm46_vm2, %v45_v1  ;;  %128 = vst.msk [vmem:[#allocation2] sm:$0xff] %vm127_vm0, %v394_v6  ;;  %v395_v19 = vmov 0   ;;  %vm42_vm6 = vcmask 0   ;;  %s396_s21 = smov [#allocation12]  }
  0x1c   :  { %v177_v4 = vshrl.u32 %v176_v3, 7  ;;  %v202_v5 = vand.u32 127, %v176_v3  ;;  %160 = vst.msk [vmem:[#allocation4] sm:$0x1] %vm159_vm4, %v394_v6  ;;  %161 = vst.msk [vmem:[#allocation5] sm:$0x1] %vm159_vm4, %v392_v0  ;;  %311 = vset.pattern.permute.xlu0 %v395_v19 }
  0x1d   :  { %43 = vst.msk [vmem:[#allocation6] sm:$0x1] %vm42_vm6, %v392_v0  ;;  %s279_s22 = sshll.u32 %s396_s21, 4  ;;  %s280_s22 = int_to_ptr.vmem [resolvable:$true] %s279_s22 }
  0x1e   :  { %296 = vmatmul.mubr.msk.f32.vlgmr.msra.gmra.mxu0 %vm46_vm2, %v44_v2  ;;  %vm203_vm3 = vcmp.eq.s32.totalorder %v177_v4, %v202_v5  ;;  %v178_v18 = vsub.s32 0, %v177_v4  ;;  %s364_s23 = scalar_lea.vmem %s280_s22, 16  ;;  %s368_s24 = scalar_lea.vmem %s280_s22, 32 }
  0x1f   :  { %p365_p10 = scmp.ne.s32.totalorder %s280_s22, %s364_s23  ;;  %p369_p11 = scmp.lt.s32.totalorder %s280_s22, %s280_s22 }
  0x20   :  { %p370_p12 = scmp.lt.s32.totalorder %s368_s24, %s364_s23 }
  0x21   :  { %v136_v51 = vld [vmem:[#allocation3] sm:$0xff] }
  0x22   :  { %v134_v38 = vld [vmem:[#allocation2] sm:$0xff]  ;;  %p371_p13 = por %p370_p12, %p369_p11 }
  0x23   :  { %v162_v16 = vld [vmem:[#allocation4] sm:$0x1]  ;;  %v163_v33 = vld [vmem:[#allocation5] sm:$0x1] }
  0x24   :  { %p372_p0 = pnand %p371_p13, %p365_p10 }
  0xde   :  { %v119_v7 = vpop.f32.mrf.mxu0 }
  0xdf   :  { %v123_v8 = vmul.f32 10.0, %v119_v7 }
  0xe0   :  { %v297_v9 = vpop.f32.mrf.mxu0 }
  0xe1   :  { %v131_v10 = vsel %vm130_vm5, %v123_v8, -inf  ;;  %v204_v47 = vsel %vm203_vm3, %v123_v8, 0.0 }
  0xe2   :  { %132 = vmax.xlane.f32.xlu0 %v131_v10  ;;  %v164_v11 = vrot.slane %v131_v10, 4  ;;  %v205_v48 = vsel %vm130_vm5, %v204_v47, 0.0 }
  0xe4   :  { %v165_v12 = vmax.f32 %v131_v10, %v164_v11  ;;  %v215_v10 = vld [vmem:[#allocation6] sm:$0x1] }
  0xe6   :  { %v166_v13 = vrot.slane %v165_v12, 2 }
  0xe8   :  { %v167_v14 = vmax.f32 %v165_v12, %v166_v13 }
  0xea   :  { %v168_v15 = vrot.slane %v167_v14, 1 }
  0xec   :  { %v169_v17 = vmax.f32 %v167_v14, %v168_v15 }
  0xee   :  { %v170_v20 = vmax.f32 %v162_v16, %v169_v17 }
  0xf0   :  { %v179_v21 = vrot.slane %v170_v20, %v178_v18  ;;  %194 = vst.msk [vmem:[#allocation4] sm:$0x1] %vm159_vm4, %v170_v20  ;;  %v171_v24 = vsub.f32 %v162_v16, %v170_v20 }
  0xf2   :  { %v181_v22 = vsub.f32 %v123_v8, %v179_v21  ;;  %v172_v25 = vmul.f32 1.442695, %v171_v24 }
  0xf4   :  { %v182_v23 = vmul.f32 1.442695, %v181_v22 }
  0xf6   :  { %312 = vpow2.f32 %v182_v23 }
  0xf7   :  { %314 = vpow2.f32 %v172_v25  ;;  %v248_v6 = vld [vmem:[#allocation4] sm:$0x1] }
 0x103   :  { %v313_v26 = vpop.eup %312 }
 0x104   :  { %v184_v27 = vsel %vm130_vm5, %v313_v26, 0.0  ;;  %v315_v32 = vpop.eup %314 }
 0x105   :  { %v185_v28 = vrot.slane %v184_v27, 4  ;;  %v174_v35 = vmul.f32 %v315_v32, %v163_v33 }
 0x107   :  { %v186_v29 = vadd.f32 %v185_v28, %v184_v27 }
 0x109   :  { %v187_v30 = vrot.slane %v186_v29, 2 }
 0x10b   :  { %v188_v31 = vadd.f32 %v187_v30, %v186_v29 }
 0x10d   :  { %v189_v34 = vrot.slane %v188_v31, 1 }
 0x10f   :  { %v190_v36 = vadd.f32 %v189_v34, %v188_v31 }
 0x111   :  { %v191_v37 = vadd.f32 %v190_v36, %v174_v35 }
 0x113   :  { %193 = vst.msk [vmem:[#allocation5] sm:$0x1] %vm159_vm4, %v191_v37 }
 0x11a   :  { %v249_v57 = vld [vmem:[#allocation5] sm:$0x1] }
 0x16b   :  { %v133_v39 = vpop.xlane.xlu0 %132 }
 0x16c   :  { %v135_v40 = vmax.f32 %v134_v38, %v133_v39 }
 0x16e   :  { %v137_v41 = vsub.f32 %v134_v38, %v135_v40  ;;  %155 = vst.msk [vmem:[#allocation2] sm:$0xff] %vm127_vm0, %v135_v40  ;;  %143 = vperm.xlu0 %311, %v135_v40  }
 0x170   :  { %v138_v49 = vmul.f32 1.442695, %v137_v41 }
 0x175   :  { %v225_v4 = vld [vmem:[#allocation2] sm:$0xff] }
 0x1e9   :  { %v144_v42 = vpop.permute.xlu0 %143 }
 0x1ea   :  { %v146_v43 = vsub.f32 %v123_v8, %v144_v42 }
 0x1ec   :  { %v147_v44 = vmul.f32 1.442695, %v146_v43 }
 0x1ee   :  { %316 = vpow2.f32 %v147_v44 }
 0x1ef   :  { %318 = vpow2.f32 %v138_v49 }
 0x1f0   :  { %320 = vlog2.f32 %v249_v57 }
 0x1fb   :  { %v317_v45 = vpop.eup %316 }
 0x1fc   :  { %v149_v46 = vsel %vm130_vm5, %v317_v45, 0.0  ;;  %v319_v50 = vpop.eup %318 }
 0x1fd   :  { %150 = vadd.xlane.f32.xlu1 %v149_v46  ;;  %v140_v52 = vmul.f32 %v319_v50, %v136_v51  ;;  %v321_v0 = vpop.eup %320 }
 0x1fe   :  { %v251_v3 = vmul.f32 0.6931472, %v321_v0 }
 0x200   :  { %v252_v8 = vadd.f32 %v251_v3, %v248_v6 }
 0x201   :  { %206 = vadd.xlane.f32.xlu1 %v205_v48 }
 0x202   :  { %v253_v9 = vsel %vm159_vm4, %v252_v8, 0.0 }
 0x286   :  { %v151_v53 = vpop.xlane.xlu1 %150 }
 0x287   :  { %v152_v54 = vadd.f32 %v151_v53, %v140_v52 }
 0x289   :  { %154 = vst.msk [vmem:[#allocation3] sm:$0xff] %vm127_vm0, %v152_v54 }
 0x28a   :  { %v207_v55 = vpop.xlane.xlu1 %206 }
 0x28b   :  { %v208_v56 = vrot.slane %v207_v55, 4 }
 0x28d   :  { %v209_v58 = vadd.f32 %v208_v56, %v207_v55 }
 0x28f   :  { %v210_v59 = vrot.slane %v209_v58, 2 }
 0x290   :  { %v226_v60 = vld [vmem:[#allocation3] sm:$0xff] }
 0x291   :  { %v211_v61 = vadd.f32 %v210_v59, %v209_v58  ;;  %322 = vlog2.f32 %v226_v60 }
 0x293   :  { %v212_v62 = vrot.slane %v211_v61, 1 }
 0x295   :  { %v213_v63 = vadd.f32 %v212_v62, %v211_v61 }
 0x297   :  { %298 = vpush %v213_v63 }
 0x29e   :  { %v323_v1 = vpop.eup %322 }
 0x29f   :  { %v228_v2 = vmul.f32 0.6931472, %v323_v1 }
 0x2a1   :  { %v229_v5 = vadd.f32 %v228_v2, %v225_v4 }
 0x2a3   :  { %v230_v7 = vsel %vm127_vm0, %v229_v5, 0.0 }
 0x2a4   :  { %231 = vadd.xlane.f32.xlu1 %v230_v7 }
 0x2a8   :  { %254 = vadd.xlane.f32.xlu1 %v253_v9 }
 0x2c8   :  { %s299_s0 = spop %298 }
 0x2c9   :  { %s216_s1 = smul.f32 2.0, %s299_s0 }
 0x2cb   :  { %v217_v11 = vstv %s216_s1 }
 0x2cc   :  { %v218_v12 = vsub.f32 %v215_v10, %v217_v11 }
 0x2ce   :  { %220 = vst.msk [vmem:[#allocation6] sm:$0x1] %vm42_vm6, %v218_v12 }
 0x2d5   :  { %v224_v27 = vld [vmem:[#allocation6] sm:$0x1] }
 0x32d   :  { %v232_v13 = vpop.xlane.xlu1 %231 }
 0x32e   :  { %v233_v14 = vrot.slane %v232_v13, 4 }
 0x330   :  { %v234_v15 = vadd.f32 %v233_v14, %v232_v13 }
 0x331   :  { %v255_v16 = vpop.xlane.xlu1 %254 }
 0x332   :  { %v235_v17 = vrot.slane %v234_v15, 2  ;;  %v256_v18 = vrot.slane %v255_v16, 4 }
 0x334   :  { %v257_v19 = vadd.f32 %v256_v18, %v255_v16  ;;  %v236_v20 = vadd.f32 %v235_v17, %v234_v15 }
 0x336   :  { %v258_v21 = vrot.slane %v257_v19, 2  ;;  %v237_v22 = vrot.slane %v236_v20, 1 }
 0x338   :  { %v259_v23 = vadd.f32 %v258_v21, %v257_v19  ;;  %v238_v24 = vadd.f32 %v237_v22, %v236_v20 }
 0x33a   :  { %300 = vpush %v238_v24  ;;  %v260_v25 = vrot.slane %v259_v23, 1 }
 0x33c   :  { %v261_v26 = vadd.f32 %v260_v25, %v259_v23 }
 0x33e   :  { %302 = vpush %v261_v26 }
 0x36b   :  { %s301_s19 = spop %300 }
 0x36c   :  { %v240_v28 = vstv %s301_s19 }
 0x36d   :  { %v241_v29 = vadd.f32 %v240_v28, %v224_v27 }
 0x36f   :  { %243 = vst.msk [vmem:[#allocation6] sm:$0x1] %vm42_vm6, %v241_v29  ;;  %s303_s20 = spop %302 }
 0x370   :  { %v263_v31 = vstv %s303_s20 }
 0x376   :  { %v247_v30 = vld [vmem:[#allocation6] sm:$0x1] }
 0x377   :  { %v264_v32 = vadd.f32 %v263_v31, %v247_v30 }
 0x379   :  { %266 = vst.msk [vmem:[#allocation6] sm:$0x1] %vm42_vm6, %v264_v32 }
 0x380   :  { %v269_v33 = vld [vmem:[#allocation6] sm:$0x1] }
 0x381   :  { %v270_v34 = vmul.f32 0.125, %v269_v33 }
 0x383   :  { %272 = vst.msk [vmem:[#allocation12] sm:$0x1] %vm42_vm6, %v270_v34 }
 0x384   :  { %375 = shalt.err (!%p372_p0)
}
 0x385   :  { %282 = dma.vmem_to_hbm [thread:$0]  %s280_s22, 16, %s448_s2, [#allocation9]  }
 0x386   :  { %388 = dma.done.wait [#allocation9], 16  }
 0x387   :  { %389 = vsyncadd [#allocation9], 4294967280 }
 0x388   :  { %286 = vsyncpa [#allocation8], 1 }
 0x389   :  { %287 = vsyncpa [#allocation11], 1 }
 0x38a   :  { %288 = vsyncpa [#allocation9], 1 }

</bundles_post_ra>
